<compile_context>
chip_gen: v7x
topology: tpu7x:2x2x1
jax: 0.10.0
libtpu: 0.0.40
codegen_flags: <defaults>
</compile_context>

<pallas_src>
import functools

import jax
import jax.numpy as jnp
from jax.experimental import pallas as pl
from jax.experimental.pallas import tpu as pltpu


def _embedding_kernel(x_ref, o_ref, *, n_freqs, max_doublings):
    """x_ref: (TILE_R, LANES); o_ref: (P, TILE_R, LANES), P = 2*N_freqs + 1."""
    x = x_ref[...]
    o_ref[0] = x.astype(o_ref.dtype)          # identity piece
    xf = x.astype(jnp.float32)                # trig in f32 even for bf16 input
    s = c = None
    doublings = 0
    for k in range(n_freqs):                  # compile-time unrolled
        if s is None or doublings >= max_doublings:
            # Exact anchor: sin/cos of 2^k * x (2^k scaling is exact in fp,
            # and the multiply is skipped entirely for k == 0).
            arg = xf if k == 0 else float(2.0 ** k) * xf
            s = jnp.sin(arg)
            c = jnp.cos(arg)
            doublings = 0
        else:
            # Double-angle recurrence: ~5 VALU ops instead of 2 transcendental
            # polynomial evaluations.
            s, c = 2.0 * (s * c), 1.0 - 2.0 * (s * s)
            doublings += 1
        o_ref[2 * k + 1] = s.astype(o_ref.dtype)
        o_ref[2 * k + 2] = c.astype(o_ref.dtype)


def _sublane_multiple(dtype):
    # 8 rows per vreg for 4-byte dtypes, 16 for 2-byte, 32 for 1-byte.
    return 8 * max(1, 4 // jnp.dtype(dtype).itemsize)


def embedding_forward(x, n_freqs, *, tile_r=256, lanes=512, max_doublings=1,
                      out_dtype=None, planar_output=False,
                      vmem_budget_bytes=28 * 1024 * 1024):
    """Positional encoding: x (..., C) -> (..., C*(2*n_freqs+1)).

    Matches EfficientNerf's `Embedding(N_freqs).forward` (C is 3 for xyz/dir).
    With planar_output=True returns the kernel-native planar layout
    (2*n_freqs+1, ..., C) so a consumer can fold the channel permutation into
    its first weight matrix (no full-size HBM transpose).
    """
    if lanes % 128 != 0:
        raise ValueError("lanes must be a multiple of 128")
    in_dtype = jnp.dtype(x.dtype)
    out_dtype = jnp.dtype(in_dtype if out_dtype is None else out_dtype)

    c = x.shape[-1]
    batch_shape = x.shape[:-1]
    n_rows = 1
    for d in batch_shape:
        n_rows *= d
    p = 2 * n_freqs + 1
    out_channels = c * p

    # Lane-dense flat 2-D view; only the < `lanes`-element flat tail is padded.
    m = n_rows * c
    pad = (-m) % lanes
    x_flat = x.reshape(m)
    if pad:
        x_flat = jnp.pad(x_flat, (0, pad))
    r_total = (m + pad) // lanes
    x2d = x_flat.reshape(r_total, lanes)

    # --- tile_r selection ----------------------------------------------------
    sub = max(_sublane_multiple(in_dtype), _sublane_multiple(out_dtype))
    row_bytes = lanes * (in_dtype.itemsize + p * out_dtype.itemsize)
    # (a) VMEM budget: input slab + all P output slabs, each double-buffered.
    vmem_cap = max(sub, (vmem_budget_bytes // (2 * row_bytes)) // sub * sub)
    tile_r = min(tile_r, vmem_cap)
    # (b) never collapse to grid=(1,): keep >=2 (>=4 when possible) blocks so
    #     the pipeline overlaps and both v7x TensorCores get work.
    if r_total > sub:
        desired_blocks = 4 if r_total >= 4 * sub else 2
        cap = (((r_total + desired_blocks - 1) // desired_blocks + sub - 1)
               // sub) * sub
        tile_r = min(tile_r, max(sub, cap))
        tile_r = max(sub, (tile_r // sub) * sub)
    else:
        tile_r = r_total              # tiny input: single full-extent block
    grid = (pl.cdiv(r_total, tile_r),)   # ragged last block handled by Pallas

    # Raise the scoped-VMEM limit explicitly (v5e's 16 MiB default would block
    # tile_r=256); stays well under v7x's 64 MiB/TC physical VMEM.
    vmem_need = 2 * tile_r * row_bytes
    vmem_limit = int(min(vmem_need + (16 << 20), 48 << 20))

    kernel = functools.partial(
        _embedding_kernel, n_freqs=n_freqs, max_doublings=max_doublings)

    out3d = pl.pallas_call(
        kernel,
        out_shape=jax.ShapeDtypeStruct((p, r_total, lanes), out_dtype),
        grid_spec=pltpu.PrefetchScalarGridSpec(
            num_scalar_prefetch=0,
            grid=grid,
            in_specs=[pl.BlockSpec((tile_r, lanes), lambda i: (i, 0))],
            out_specs=pl.BlockSpec((p, tile_r, lanes), lambda i: (0, i, 0)),
        ),
        compiler_params=pltpu.CompilerParams(
            dimension_semantics=("parallel",),
            vmem_limit_bytes=vmem_limit),
    )(x2d)

    out_flat = out3d.reshape(p, r_total * lanes)
    if pad:
        out_flat = out_flat[:, :m]

    if planar_output:
        # Review option (a): hand the consumer the kernel-native planar layout;
        # the channel permutation is folded into the consumer's first weight
        # matrix, so no full-size HBM transpose ever happens.
        return out_flat.reshape((p,) + batch_shape + (c,))

    # Exact PyTorch layout: a single fused XLA slice+transpose remains (every
    # legal output block of the interleaved layout needs all P pieces, so this
    # permute cannot be folded into the kernel's DMA addressing).
    out = jnp.transpose(out_flat.reshape(p, n_rows, c), (1, 0, 2))
    return out.reshape(batch_shape + (out_channels,))


def embedding_reference(x, n_freqs):
    """Pure-JAX reference matching the PyTorch forward exactly."""
    out = [x]
    for k in range(n_freqs):
        freq = 2.0 ** k
        out.append(jnp.sin(freq * x))
        out.append(jnp.cos(freq * x))
    return jnp.concatenate(out, axis=-1)


if __name__ == "__main__":
    key = jax.random.PRNGKey(0)

    # Case 1: direction embedding, N_freqs=4 -> 27 output channels, tiny batch.
    n_freqs_dir = 4
    x_dir = jax.random.normal(key, (2, 8, 3), dtype=jnp.float32)
    out_dir = jax.block_until_ready(embedding_forward(x_dir, n_freqs_dir))
    ref_dir = embedding_reference(x_dir, n_freqs_dir)
    assert out_dir.shape == (2, 8, 3 * (2 * n_freqs_dir + 1)), out_dir.shape
    assert jnp.allclose(out_dir, ref_dir, atol=1e-6, rtol=1e-6), "dir mismatch"

    # Case 2: xyz embedding, N_freqs=10 -> 63 channels; exercises a multi-block
    # grid with a ragged last block (small tile_r on purpose) and the
    # double-angle recurrence across all 10 octaves.
    n_freqs_xyz = 10
    x_xyz = jax.random.normal(key, (5, 7, 64, 3), dtype=jnp.float32)
    out_xyz = jax.block_until_ready(
        embedding_forward(x_xyz, n_freqs_xyz, tile_r=8, lanes=512))
    ref_xyz = embedding_reference(x_xyz, n_freqs_xyz)
    assert out_xyz.shape == (5, 7, 64, 3 * (2 * n_freqs_xyz + 1)), out_xyz.shape
    assert jnp.allclose(out_xyz, ref_xyz, atol=1e-6, rtol=1e-6), "xyz mismatch"

    # Case 3: planar (consumer-fused) layout -- no wrapper-side transpose.
    planar = jax.block_until_ready(
        embedding_forward(x_dir, n_freqs_dir, planar_output=True))
    p = 2 * n_freqs_dir + 1
    assert planar.shape == (p, 2, 8, 3), planar.shape
    interleaved = jnp.moveaxis(planar, 0, -2).reshape(2, 8, 3 * p)
    assert jnp.allclose(interleaved, ref_dir, atol=1e-6, rtol=1e-6), \
        "planar mismatch"

    # Case 4: bf16 output (halves the dominant HBM write for bf16 consumers).
    out_bf16 = jax.block_until_ready(
        embedding_forward(x_dir, n_freqs_dir, out_dtype=jnp.bfloat16))
    assert out_bf16.dtype == jnp.bfloat16
    assert jnp.allclose(out_bf16.astype(jnp.float32), ref_dir,
                        atol=5e-2, rtol=2e-2), "bf16 mismatch"

    print("KERNEL_OK")
</pallas_src>

<mosaic_0001>
module attributes {stable_mosaic.version = 11 : i64} {
  func.func @_embedding_kernel(%arg0: i32, %arg1: memref<1x512xf32, #tpu.memory_space<vmem>>, %arg2: memref<9x1x512xf32, #tpu.memory_space<vmem>>) attributes {dimension_semantics = [#tpu.dimension_semantics<parallel>], iteration_bounds = array<i64: 1>, scalar_prefetch = 0 : i64, scratch_operands = 0 : i64, tpu.core_type = #tpu.core_type<tc>, window_params = [{transform_indices = @transform_0, window_bounds = array<i64: 1, 512>}, {transform_indices = @transform_1, window_bounds = array<i64: 9, 1, 512>}]} {
    %c0 = arith.constant 0 : index
    %c0_0 = arith.constant 0 : index
    %0 = vector.load %arg1[%c0, %c0_0] : memref<1x512xf32, #tpu.memory_space<vmem>>, vector<1x512xf32>
    %c0_1 = arith.constant 0 : index
    %c0_2 = arith.constant 0 : index
    %c0_3 = arith.constant 0 : index
    %1 = vector.load %arg2[%c0_1, %c0_2, %c0_3] : memref<9x1x512xf32, #tpu.memory_space<vmem>>, vector<1x1x512xf32>
    %2 = vector.shape_cast %1 : vector<1x1x512xf32> to vector<1x512xf32>
    %3 = vector.shape_cast %0 : vector<1x512xf32> to vector<1x1x512xf32>
    tpu.vector_store %arg2[%c0_1, %c0_2, %c0_3], %3 {strides = array<i32>} : memref<9x1x512xf32, #tpu.memory_space<vmem>>, vector<1x1x512xf32>,
    %4 = math.sin %0 : vector<1x512xf32>
    %5 = math.cos %0 : vector<1x512xf32>
    %c1 = arith.constant 1 : index
    %c0_4 = arith.constant 0 : index
    %c0_5 = arith.constant 0 : index
    %6 = vector.load %arg2[%c1, %c0_4, %c0_5] : memref<9x1x512xf32, #tpu.memory_space<vmem>>, vector<1x1x512xf32>
    %7 = vector.shape_cast %6 : vector<1x1x512xf32> to vector<1x512xf32>
    %8 = vector.shape_cast %4 : vector<1x512xf32> to vector<1x1x512xf32>
    tpu.vector_store %arg2[%c1, %c0_4, %c0_5], %8 {strides = array<i32>} : memref<9x1x512xf32, #tpu.memory_space<vmem>>, vector<1x1x512xf32>,
    %c2 = arith.constant 2 : index
    %c0_6 = arith.constant 0 : index
    %c0_7 = arith.constant 0 : index
    %9 = vector.load %arg2[%c2, %c0_6, %c0_7] : memref<9x1x512xf32, #tpu.memory_space<vmem>>, vector<1x1x512xf32>
    %10 = vector.shape_cast %9 : vector<1x1x512xf32> to vector<1x512xf32>
    %11 = vector.shape_cast %5 : vector<1x512xf32> to vector<1x1x512xf32>
    tpu.vector_store %arg2[%c2, %c0_6, %c0_7], %11 {strides = array<i32>} : memref<9x1x512xf32, #tpu.memory_space<vmem>>, vector<1x1x512xf32>,
    %12 = arith.mulf %4, %5 : vector<1x512xf32>
    %cst = arith.constant 2.000000e+00 : f32
    %13 = vector.broadcast %cst : f32 to vector<1x512xf32>
    %14 = arith.mulf %13, %12 : vector<1x512xf32>
    %15 = arith.mulf %4, %4 : vector<1x512xf32>
    %cst_8 = arith.constant 2.000000e+00 : f32
    %16 = vector.broadcast %cst_8 : f32 to vector<1x512xf32>
    %17 = arith.mulf %16, %15 : vector<1x512xf32>
    %cst_9 = arith.constant 1.000000e+00 : f32
    %18 = vector.broadcast %cst_9 : f32 to vector<1x512xf32>
    %19 = arith.subf %18, %17 : vector<1x512xf32>
    %c3 = arith.constant 3 : index
    %c0_10 = arith.constant 0 : index
    %c0_11 = arith.constant 0 : index
    %20 = vector.load %arg2[%c3, %c0_10, %c0_11] : memref<9x1x512xf32, #tpu.memory_space<vmem>>, vector<1x1x512xf32>
    %21 = vector.shape_cast %20 : vector<1x1x512xf32> to vector<1x512xf32>
    %22 = vector.shape_cast %14 : vector<1x512xf32> to vector<1x1x512xf32>
    tpu.vector_store %arg2[%c3, %c0_10, %c0_11], %22 {strides = array<i32>} : memref<9x1x512xf32, #tpu.memory_space<vmem>>, vector<1x1x512xf32>,
    %c4 = arith.constant 4 : index
    %c0_12 = arith.constant 0 : index
    %c0_13 = arith.constant 0 : index
    %23 = vector.load %arg2[%c4, %c0_12, %c0_13] : memref<9x1x512xf32, #tpu.memory_space<vmem>>, vector<1x1x512xf32>
    %24 = vector.shape_cast %23 : vector<1x1x512xf32> to vector<1x512xf32>
    %25 = vector.shape_cast %19 : vector<1x512xf32> to vector<1x1x512xf32>
    tpu.vector_store %arg2[%c4, %c0_12, %c0_13], %25 {strides = array<i32>} : memref<9x1x512xf32, #tpu.memory_space<vmem>>, vector<1x1x512xf32>,
    %cst_14 = arith.constant 4.000000e+00 : f32
    %26 = vector.broadcast %cst_14 : f32 to vector<1x512xf32>
    %27 = arith.mulf %26, %0 : vector<1x512xf32>
    %28 = math.sin %27 : vector<1x512xf32>
    %29 = math.cos %27 : vector<1x512xf32>
    %c5 = arith.constant 5 : index
    %c0_15 = arith.constant 0 : index
    %c0_16 = arith.constant 0 : index
    %30 = vector.load %arg2[%c5, %c0_15, %c0_16] : memref<9x1x512xf32, #tpu.memory_space<vmem>>, vector<1x1x512xf32>
    %31 = vector.shape_cast %30 : vector<1x1x512xf32> to vector<1x512xf32>
    %32 = vector.shape_cast %28 : vector<1x512xf32> to vector<1x1x512xf32>
    tpu.vector_store %arg2[%c5, %c0_15, %c0_16], %32 {strides = array<i32>} : memref<9x1x512xf32, #tpu.memory_space<vmem>>, vector<1x1x512xf32>,
    %c6 = arith.constant 6 : index
    %c0_17 = arith.constant 0 : index
    %c0_18 = arith.constant 0 : index
    %33 = vector.load %arg2[%c6, %c0_17, %c0_18] : memref<9x1x512xf32, #tpu.memory_space<vmem>>, vector<1x1x512xf32>
    %34 = vector.shape_cast %33 : vector<1x1x512xf32> to vector<1x512xf32>
    %35 = vector.shape_cast %29 : vector<1x512xf32> to vector<1x1x512xf32>
    tpu.vector_store %arg2[%c6, %c0_17, %c0_18], %35 {strides = array<i32>} : memref<9x1x512xf32, #tpu.memory_space<vmem>>, vector<1x1x512xf32>,
    %36 = arith.mulf %28, %29 : vector<1x512xf32>
    %cst_19 = arith.constant 2.000000e+00 : f32
    %37 = vector.broadcast %cst_19 : f32 to vector<1x512xf32>
    %38 = arith.mulf %37, %36 : vector<1x512xf32>
    %39 = arith.mulf %28, %28 : vector<1x512xf32>
    %cst_20 = arith.constant 2.000000e+00 : f32
    %40 = vector.broadcast %cst_20 : f32 to vector<1x512xf32>
    %41 = arith.mulf %40, %39 : vector<1x512xf32>
    %cst_21 = arith.constant 1.000000e+00 : f32
    %42 = vector.broadcast %cst_21 : f32 to vector<1x512xf32>
    %43 = arith.subf %42, %41 : vector<1x512xf32>
    %c7 = arith.constant 7 : index
    %c0_22 = arith.constant 0 : index
    %c0_23 = arith.constant 0 : index
    %44 = vector.load %arg2[%c7, %c0_22, %c0_23] : memref<9x1x512xf32, #tpu.memory_space<vmem>>, vector<1x1x512xf32>
    %45 = vector.shape_cast %44 : vector<1x1x512xf32> to vector<1x512xf32>
    %46 = vector.shape_cast %38 : vector<1x512xf32> to vector<1x1x512xf32>
    tpu.vector_store %arg2[%c7, %c0_22, %c0_23], %46 {strides = array<i32>} : memref<9x1x512xf32, #tpu.memory_space<vmem>>, vector<1x1x512xf32>,
    %c8 = arith.constant 8 : index
    %c0_24 = arith.constant 0 : index
    %c0_25 = arith.constant 0 : index
    %47 = vector.load %arg2[%c8, %c0_24, %c0_25] : memref<9x1x512xf32, #tpu.memory_space<vmem>>, vector<1x1x512xf32>
    %48 = vector.shape_cast %47 : vector<1x1x512xf32> to vector<1x512xf32>
    %49 = vector.shape_cast %43 : vector<1x512xf32> to vector<1x1x512xf32>
    tpu.vector_store %arg2[%c8, %c0_24, %c0_25], %49 {strides = array<i32>} : memref<9x1x512xf32, #tpu.memory_space<vmem>>, vector<1x1x512xf32>,
    return
  }
  func.func @transform_0(%arg0: i32) -> (i32, i32) {
    %c0_i32 = arith.constant 0 : i32
    %c0_i32_0 = arith.constant 0 : i32
    return %arg0, %c0_i32 : i32, i32
  }
  func.func @transform_1(%arg0: i32) -> (i32, i32, i32) {
    %c0_i32 = arith.constant 0 : i32
    %c0_i32_0 = arith.constant 0 : i32
    %c0_i32_1 = arith.constant 0 : i32
    return %c0_i32, %arg0, %c0_i32_0 : i32, i32, i32
  }
}

</mosaic_0001>

<bundles_post_ra>
// kernel: tpu_custom_call.1
= control target key start
LH: loop header
LB: loop body
LE: loop exit
PB: predicated region body
PF: predicated region fallthrough
CT: control target
= control target key end

     0   :  { %6 = vsyncpa [#allocation3], 0  ;;  %s711_s0 = inlined_call_operand.hbm [shape: f32[1,512], index: 0, kind: input, shape index: {}]   ;;  %s712_s1 = inlined_call_operand.hbm [shape: f32[9,1,512], index: 1, kind: output, shape index: {}]  }
   0x1   :  { %7 = vsyncpa [#allocation4], 0  ;;  %s575_s6 = smov [#allocation2]   ;;  %s527_s10 = scalar_lea.hbm %s711_s0, 64 }
   0x2   :  { %s14_s7 = sshll.u32 %s575_s6, 4  ;;  %p528_p0 = scmp.ne.s32.totalorder %s711_s0, %s527_s10  ;;  %s15_s7 = int_to_ptr.vmem [resolvable:$true] %s14_s7 }
   0x3   :  { %p531_p1 = scmp.lt.u32.totalorder %s527_s10, %s711_s0 }
   0x5   :  { %p533_p2 = pnand %p531_p1, %p528_p0 }
   0x7   :  { %536 = shalt.err (!%p533_p2)
}
   0x8   :  { %s537_s15 = scalar_lea.vmem %s15_s7, 64  ;;  %p542_p4 = scmp.lt.s32.totalorder %s15_s7, %s15_s7 }
   0x9   :  { %p538_p3 = scmp.ne.s32.totalorder %s15_s7, %s537_s15  ;;  %p543_p5 = scmp.lt.s32.totalorder %s537_s15, %s537_s15 }
   0xb   :  { %p544_p6 = por %p543_p5, %p542_p4 }
   0xd   :  { %p545_p7 = pnand %p544_p6, %p538_p3 }
   0xf   :  { %548 = shalt.err (!%p545_p7)
}
  0x10   :  { %17 = dma.hbm_to_vmem [thread:$0]  %s711_s0, 64, %s15_s7, [#allocation3]  }
  0x11   :  { %571 = dma.done.wait [#allocation3], 64  }
  0x12   :  { %572 = vsyncadd [#allocation3], 4294967232  ;;  %v22_v0 = vlaneseq  ;;  %v611_v2 = vld [vmem:[#allocation2] sm:$0xf]  ;;  %v576_v23 = vmov 683565275  }
  0x13   :  { %v30_v3 = vand.u32 2139095040, %v611_v2  ;;  %v27_v4 = vand.u32 2147483647, %v611_v2  ;;  %v619_v5 = vmul.f32 4.0, %v611_v2  ;;  %v577_v25 = vmov 2475754826  }
  0x14   :  { %vm607_vm0 = vcmp.lt.s32.totalorder %v22_v0, 512  ;;  %v578_v27 = vmov 2131351028   ;;  %v579_v29 = vmov 2102212464   ;;  %vm29_vm15 = vcmp.lt.s32.totalorder %v611_v2, 0 }
  0x15   :  { %26 = vst.msk [vmem:[#allocation5] sm:$0xf] %vm607_vm0, %v611_v2  ;;  %v31_v6 = vshrl.u32 %v30_v3, 23  ;;  %v34_v7 = vand.u32 8388607, %v27_v4  ;;  %v251_v9 = vand.u32 2139095040, %v619_v5 }
  0x16   :  { %v248_v8 = vand.u32 2147483647, %v619_v5  ;;  %v580_v31 = vmov 920167782   ;;  %v581_v38 = vmov 1326507024  }
  0x17   :  { %v485_v10 = vadd.s32 4294967169, %v31_v6  ;;  %v252_v11 = vshrl.u32 %v251_v9, 23  ;;  %v35_v13 = vor.u32 8388608, %v34_v7  ;;  %s582_s0 = smov [#allocation5]  }
  0x18   :  { %v627_v15 = vand.u32 8388607, %v248_v8  ;;  %s473_s18 = sshll.u32 %s582_s0, 4  ;;  %s474_s18 = int_to_ptr.vmem [resolvable:$true] %s473_s18 }
  0x19   :  { %v37_v12 = vadd.s32 1, %v485_v10  ;;  %v493_v14 = vadd.s32 4294967169, %v252_v11  ;;  %v629_v20 = vshll.u32 %v35_v13, 8  ;;  %s549_s19 = scalar_lea.vmem %s474_s18, 576  ;;  %p554_p9 = scmp.lt.s32.totalorder %s474_s18, %s474_s18 }
  0x1a   :  { %v256_v21 = vor.u32 8388608, %v627_v15  ;;  %p550_p8 = scmp.ne.s32.totalorder %s474_s18, %s549_s19  ;;  %p555_p10 = scmp.lt.s32.totalorder %s549_s19, %s549_s19 }
  0x1b   :  { %vm38_vm1 = vcmp.gt.s32.totalorder %v37_v12, 0  ;;  %v258_v17 = vadd.s32 1, %v493_v14 }
  0x1c   :  { %v39_v16 = vsel %vm38_vm1, %v37_v12, 0  ;;  %vm28_vm1 = vcmp.le.f32.partialorder %v27_v4, 0.7853982  ;;  %p556_p11 = por %p555_p10, %p554_p9 }
  0x1d   :  { %v40_v18 = vshrl.u32 %v39_v16, 5  ;;  %v41_v19 = vand.u32 31, %v39_v16  ;;  %vm259_vm2 = vcmp.gt.s32.totalorder %v258_v17, 0 }
  0x1e   :  { %v260_v43 = vsel %vm259_vm2, %v258_v17, 0  ;;  %vm250_vm2 = vcmp.lt.s32.totalorder %v619_v5, 0  ;;  %p557_p12 = pnand %p556_p11, %p550_p8 }
  0x1f   :  { %v42_v22 = vsub.s32 32, %v41_v19  ;;  %v44_v24 = vshll.u32 %v576_v23, %v41_v19  ;;  %v47_v26 = vshll.u32 %v577_v25, %v41_v19  ;;  %v50_v28 = vshll.u32 %v578_v27, %v41_v19 }
  0x20   :  { %v53_v30 = vshll.u32 %v579_v29, %v41_v19  ;;  %v56_v32 = vshll.u32 %v580_v31, %v41_v19  ;;  %vm59_vm3 = vcmp.lt.s32.totalorder %v40_v18, 1  ;;  %vm60_vm4 = vcmp.lt.s32.totalorder %v40_v18, 2 }
  0x21   :  { %v43_v33 = vshrl.u32 %v576_v23, %v42_v22  ;;  %v45_v34 = vshrl.u32 %v577_v25, %v42_v22  ;;  %v48_v35 = vshrl.u32 %v578_v27, %v42_v22  ;;  %v51_v36 = vshrl.u32 %v579_v29, %v42_v22 }
  0x22   :  { %v54_v37 = vshrl.u32 %v580_v31, %v42_v22  ;;  %v57_v39 = vshrl.u32 %v581_v38, %v42_v22  ;;  %vm61_vm5 = vcmp.lt.s32.totalorder %v40_v18, 3  ;;  %vm62_vm6 = vcmp.lt.s32.totalorder %v40_v18, 4 }
  0x23   :  { %v46_v40 = vor.u32 %v45_v34, %v44_v24  ;;  %v49_v41 = vor.u32 %v48_v35, %v47_v26  ;;  %v52_v42 = vor.u32 %v51_v36, %v50_v28  ;;  %v261_v46 = vshrl.u32 %v260_v43, 5 }
  0x24   :  { %v55_v44 = vor.u32 %v54_v37, %v53_v30  ;;  %v58_v45 = vor.u32 %v57_v39, %v56_v32  ;;  %v262_v47 = vand.u32 31, %v260_v43 }
  0x25   :  { %v63_v48 = vsel %vm59_vm3, %v43_v33, %v46_v40  ;;  %v64_v49 = vsel %vm62_vm6, %v52_v42, 2102212464  ;;  %v67_v50 = vsel %vm59_vm3, %v46_v40, %v49_v41  ;;  %v71_v51 = vsel %vm59_vm3, %v49_v41, %v52_v42 }
  0x26   :  { %v65_v52 = vsel %vm61_vm5, %v49_v41, %v64_v49  ;;  %v68_v53 = vsel %vm62_vm6, %v55_v44, 920167782  ;;  %v72_v54 = vsel %vm62_vm6, %v58_v45, 1326507024  ;;  %v263_v55 = vsub.s32 32, %v262_v47 }
  0x27   :  { %v66_v56 = vsel %vm60_vm4, %v63_v48, %v65_v52  ;;  %v69_v57 = vsel %vm61_vm5, %v52_v42, %v68_v53  ;;  %v73_v58 = vsel %vm61_vm5, %v55_v44, %v72_v54  ;;  %v265_v59 = vshll.u32 %v576_v23, %v262_v47 }
  0x28   :  { %v70_v60 = vsel %vm60_vm4, %v67_v50, %v69_v57  ;;  %v74_v61 = vsel %vm60_vm4, %v71_v51, %v73_v58  ;;  %v82_v62 = vmul.u32 %v629_v20, %v66_v56  ;;  %v264_v63 = vshrl.u32 %v576_v23, %v263_v55 }
  0x29   :  { %v644_v0 = vmul.u32.u64.low %v629_v20, %v74_v61  ;;  %v645_v3 = vmul.u32.u64.high %v629_v20, %v74_v61, %v644_v0  ;;  %v648_v6 = vmul.u32.u64.low %v629_v20, %v70_v60  ;;  %v649_v7 = vmul.u32.u64.high %v629_v20, %v70_v60, %v648_v6 }
  0x2a   :  { %v266_v9 = vshrl.u32 %v577_v25, %v263_v55  ;;  %v268_v10 = vshll.u32 %v577_v25, %v262_v47  ;;  %v269_v11 = vshrl.u32 %v578_v27, %v263_v55  ;;  %v271_v12 = vshll.u32 %v578_v27, %v262_v47 }
  0x2b   :  { %v272_v13 = vshrl.u32 %v579_v29, %v263_v55  ;;  %v274_v14 = vshll.u32 %v579_v29, %v262_v47  ;;  %v275_v16 = vshrl.u32 %v580_v31, %v263_v55  ;;  %v277_v17 = vshll.u32 %v580_v31, %v262_v47 }
  0x2c   :  { %v267_v18 = vor.u32 %v266_v9, %v265_v59  ;;  %v270_v19 = vor.u32 %v269_v11, %v268_v10  ;;  %v278_v22 = vshrl.u32 %v581_v38, %v263_v55  ;;  %vm280_vm7 = vcmp.lt.s32.totalorder %v261_v46, 1 }
  0x2d   :  { %vm84_vm8 = vc.u32 %v645_v3, %v648_v6  ;;  %v85_v23 = vadd.s32 1, %v649_v7  ;;  %v273_v24 = vor.u32 %v272_v13, %v271_v12  ;;  %v296_v20 = vshll.u32 %v256_v21, 8 }
  0x2e   :  { %v276_v26 = vor.u32 %v275_v16, %v274_v14  ;;  %v279_v25 = vor.u32 %v278_v22, %v277_v17  ;;  %vm281_vm9 = vcmp.lt.s32.totalorder %v261_v46, 2  ;;  %vm282_vm10 = vcmp.lt.s32.totalorder %v261_v46, 3 }
  0x2f   :  { %v86_v27 = vsel %vm84_vm8, %v85_v23, %v649_v7  ;;  %vm283_vm11 = vcmp.lt.s32.totalorder %v261_v46, 4  ;;  %v284_v28 = vsel %vm280_vm7, %v264_v63, %v267_v18  ;;  %v288_v29 = vsel %vm280_vm7, %v267_v18, %v270_v19 }
  0x30   :  { %v87_v30 = vadd.s32 %v86_v27, %v82_v62  ;;  %v285_v31 = vsel %vm283_vm11, %v273_v24, 2102212464  ;;  %v289_v32 = vsel %vm283_vm11, %v276_v26, 920167782  ;;  %v292_v33 = vsel %vm280_vm7, %v270_v19, %v273_v24 }
  0x31   :  { %v286_v34 = vsel %vm282_vm10, %v270_v19, %v285_v31  ;;  %v290_v35 = vsel %vm282_vm10, %v273_v24, %v289_v32  ;;  %v293_v15 = vsel %vm283_vm11, %v279_v25, 1326507024  ;;  %v83_v58 = vadd.s32 %v648_v6, %v645_v3 }
  0x32   :  { %v88_v21 = vadd.s32 536870912, %v87_v30  ;;  %v291_v36 = vsel %vm281_vm9, %v288_v29, %v290_v35  ;;  %v294_v37 = vsel %vm282_vm10, %v276_v26, %v293_v15  ;;  %v287_v38 = vsel %vm281_vm9, %v284_v28, %v286_v34 }
  0x33   :  { %v295_v39 = vsel %vm281_vm9, %v292_v33, %v294_v37  ;;  %v662_v40 = vmul.u32.u64.low %v296_v20, %v291_v36  ;;  %v663_v41 = vmul.u32.u64.high %v296_v20, %v291_v36, %v662_v40  ;;  %v303_v47 = vmul.u32 %v296_v20, %v287_v38 }
  0x34   :  { %v89_v42 = vshrl.u32 %v88_v21, 30  ;;  %v665_v43 = vmul.u32.u64.low %v296_v20, %v295_v39  ;;  %v666_v44 = vmul.u32.u64.high %v296_v20, %v295_v39, %v665_v43  ;;  %vm249_vm3 = vcmp.le.f32.partialorder %v248_v8, 0.7853982 }
  0x35   :  { %v306_v48 = vadd.s32 1, %v663_v41  ;;  %vm119_vm10 = vweird.f32 %v611_v2 }
  0x36   :  { %v90_v45 = vshll.u32 %v89_v42, 30  ;;  %vm305_vm12 = vc.u32 %v666_v44, %v662_v40  ;;  %v113_v19 = vsub.s32 4, %v89_v42  ;;  %v304_v3 = vadd.s32 %v662_v40, %v666_v44 }
  0x37   :  { %v307_v50 = vsel %vm305_vm12, %v306_v48, %v663_v41 }
  0x38   :  { %v91_v49 = vsub.s32 %v87_v30, %v90_v45  ;;  %v308_v52 = vadd.s32 %v307_v50, %v303_v47  ;;  %v114_v25 = vsel %vm29_vm15, %v113_v19, %v89_v42 }
  0x39   :  { %v116_v31 = vsel %vm28_vm1, 0, %v114_v25 }
  0x3a   :  { %v93_v51 = vsub.s32 0, %v91_v49  ;;  %v309_v53 = vadd.s32 536870912, %v308_v52  ;;  %v120_v15 = vadd.s32 3, %v116_v31  ;;  %v224_v4 = vand.u32 3, %v116_v31 }
  0x3c   :  { %v486_v46 = vmin.u32 %v93_v51, %v91_v49  ;;  %v310_v55 = vshrl.u32 %v309_v53, 30  ;;  %v121_v38 = vand.u32 3, %v120_v15  ;;  %vm229_vm5 = vcmp.eq.s32.totalorder %v224_v4, 2 }
  0x3d   :  { %vm226_vm7 = vcmp.eq.s32.totalorder %v224_v4, 0  ;;  %vm225_vm9 = vcmp.lt.s32.totalorder %v224_v4, 2 }
  0x3e   :  { %v95_v54 = vclz %v486_v46  ;;  %v311_v57 = vshll.u32 %v310_v55, 30  ;;  %v334_v36 = vsub.s32 4, %v310_v55  ;;  %vm126_vm4 = vcmp.eq.s32.totalorder %v121_v38, 2 }
  0x3f   :  { %vm123_vm6 = vcmp.eq.s32.totalorder %v121_v38, 0  ;;  %vm122_vm8 = vcmp.lt.s32.totalorder %v121_v38, 2 }
  0x40   :  { %v487_v56 = vadd.s32 4294967294, %v95_v54  ;;  %v312_v60 = vsub.s32 %v308_v52, %v311_v57  ;;  %v335_v40 = vsel %vm250_vm2, %v334_v36, %v310_v55 }
  0x41   :  { %v337_v44 = vsel %vm249_vm3, 0, %v335_v40 }
  0x42   :  { %vm488_vm13 = vcmp.lt.s32.totalorder %v487_v56, 0  ;;  %v314_v0 = vsub.s32 0, %v312_v60  ;;  %v341_v50 = vadd.s32 3, %v337_v44 }
  0x43   :  { %v98_v59 = vsel %vm488_vm13, 0, %v487_v56 }
  0x44   :  { %v99_v61 = vsub.s32 32, %v98_v59  ;;  %v100_v62 = vshll.u32 %v91_v49, %v98_v59  ;;  %v103_v63 = vsub.s32 4294967266, %v98_v59  ;;  %v494_v10 = vmin.u32 %v314_v0, %v312_v60 }
  0x45   :  { %v445_v59 = vand.u32 3, %v337_v44 }
  0x46   :  { %v101_v7 = vshrl.u32 %v83_v58, %v99_v61  ;;  %v104_v9 = vadd.s32 127, %v103_v63  ;;  %v316_v13 = vclz %v494_v10  ;;  %v342_v58 = vand.u32 3, %v341_v50 }
  0x47   :  { %vm450_vm12 = vcmp.eq.s32.totalorder %v445_v59, 2 }
  0x48   :  { %v102_v11 = vor.u32 %v101_v7, %v100_v62  ;;  %v105_v12 = vshll.u32 %v104_v9, 23  ;;  %v495_v17 = vadd.s32 4294967294, %v316_v13  ;;  %vm347_vm11 = vcmp.eq.s32.totalorder %v342_v58, 2 }
  0x49   :  { %vm344_vm13 = vcmp.eq.s32.totalorder %v342_v58, 0 }
  0x4a   :  { %v106_v14 = vor.u32 4788187, %v105_v12  ;;  %v109_v16 = vcvt.s32.f32 %v102_v11  ;;  %vm496_vm14 = vcmp.lt.s32.totalorder %v495_v17, 0 }
  0x4b   :  { %v319_v22 = vsel %vm496_vm14, 0, %v495_v17  ;;  %vm447_vm14 = vcmp.eq.s32.totalorder %v445_v59, 0 }
  0x4c   :  { %v107_v18 = vand.u32 2147483647, %v106_v14  ;;  %v320_v23 = vsub.s32 32, %v319_v22  ;;  %v321_v24 = vshll.u32 %v312_v60, %v319_v22  ;;  %v324_v20 = vsub.s32 4294967266, %v319_v22 }
  0x4e   :  { %v110_v6 = vmul.f32 %v109_v16, %v107_v18  ;;  %v322_v27 = vshrl.u32 %v304_v3, %v320_v23  ;;  %v325_v28 = vadd.s32 127, %v324_v20 }
  0x50   :  { %v111_v26 = vxor.u32 2147483648, %v110_v6  ;;  %v323_v32 = vor.u32 %v322_v27, %v321_v24  ;;  %v326_v33 = vshll.u32 %v325_v28, 23 }
  0x52   :  { %v112_v29 = vsel %vm29_vm15, %v111_v26, %v110_v6  ;;  %v327_v34 = vor.u32 4788187, %v326_v33  ;;  %v330_v35 = vcvt.s32.f32 %v323_v32  ;;  %vm343_vm15 = vcmp.lt.s32.totalorder %v342_v58, 2 }
  0x53   :  { %v115_v30 = vsel %vm28_vm1, %v611_v2, %v112_v29  ;;  %vm446_vm1 = vcmp.lt.s32.totalorder %v445_v59, 2 }
  0x54   :  { %519 = vcosq.f32 %v115_v30  ;;  %v328_v21 = vand.u32 2147483647, %v327_v34 }
  0x55   :  { %521 = vsinq.f32 %v115_v30 }
  0x56   :  { %v331_v37 = vmul.f32 %v330_v35, %v328_v21 }
  0x58   :  { %v332_v39 = vxor.u32 2147483648, %v331_v37 }
  0x5a   :  { %v333_v41 = vsel %vm250_vm2, %v332_v39, %v331_v37  ;;  %vm340_vm2 = vweird.f32 %v619_v5 }
  0x5b   :  { %v336_v43 = vsel %vm249_vm3, %v619_v5, %v333_v41 }
  0x5c   :  { %523 = vcosq.f32 %v336_v43 }
  0x5d   :  { %525 = vsinq.f32 %v336_v43 }
  0x5e   :  { %v520_v42 = vpop.eup %519 }
  0x5f   :  { %v522_v45 = vpop.eup %521  ;;  %v127_v47 = vxor.u32 2147483648, %v520_v42 }
  0x60   :  { %v124_v48 = vxor.u32 2147483648, %v522_v45 }
  0x61   :  { %v128_v8 = vsel %vm126_vm4, %v127_v47, %v522_v45  ;;  %v231_v49 = vsel %vm229_vm5, %v127_v47, %v522_v45 }
  0x62   :  { %v125_v51 = vsel %vm123_vm6, %v520_v42, %v124_v48  ;;  %v228_v52 = vsel %vm226_vm7, %v520_v42, %v124_v48 }
  0x63   :  { %v129_v46 = vsel %vm122_vm8, %v125_v51, %v128_v8  ;;  %v232_v53 = vsel %vm225_vm9, %v228_v52, %v231_v49 }
  0x64   :  { %v130_v54 = vsel %vm119_vm10, nan, %v129_v46  ;;  %v233_v55 = vsel %vm119_vm10, nan, %v232_v53 }
  0x65   :  { %235 = vst.msk [vmem:[#allocation5 + $0x4] sm:$0xf] %vm607_vm0, %v130_v54  ;;  %v240_v56 = vmul.f32 %v130_v54, %v130_v54  ;;  %237 = vst.msk [vmem:[#allocation5 + $0x8] sm:$0xf] %vm607_vm0, %v233_v55  ;;  %v238_v57 = vmul.f32 %v233_v55, %v130_v54 }
  0x66   :  { %v524_v61 = vpop.eup %523 }
  0x67   :  { %v239_v2 = vmul.f32 2.0, %v238_v57  ;;  %v241_v60 = vmul.f32 2.0, %v240_v56  ;;  %v526_v63 = vpop.eup %525  ;;  %v348_v0 = vxor.u32 2147483648, %v524_v61 }
  0x68   :  { %v345_v7 = vxor.u32 2147483648, %v526_v63 }
  0x69   :  { %244 = vst.msk [vmem:[#allocation5 + $0xc] sm:$0xf] %vm607_vm0, %v239_v2  ;;  %v242_v62 = vsub.f32 1.0, %v241_v60  ;;  %v349_v9 = vsel %vm347_vm11, %v348_v0, %v526_v63  ;;  %v452_v10 = vsel %vm450_vm12, %v348_v0, %v526_v63 }
  0x6a   :  { %v346_v11 = vsel %vm344_vm13, %v524_v61, %v345_v7  ;;  %v449_v12 = vsel %vm447_vm14, %v524_v61, %v345_v7 }
  0x6b   :  { %246 = vst.msk [vmem:[#allocation5 + $0x10] sm:$0xf] %vm607_vm0, %v242_v62  ;;  %v350_v13 = vsel %vm343_vm15, %v346_v11, %v349_v9  ;;  %v453_v14 = vsel %vm446_vm1, %v449_v12, %v452_v10 }
  0x6c   :  { %v351_v16 = vsel %vm340_vm2, nan, %v350_v13  ;;  %v454_v17 = vsel %vm340_vm2, nan, %v453_v14 }
  0x6d   :  { %456 = vst.msk [vmem:[#allocation5 + $0x14] sm:$0xf] %vm607_vm0, %v351_v16  ;;  %v461_v18 = vmul.f32 %v351_v16, %v351_v16  ;;  %458 = vst.msk [vmem:[#allocation5 + $0x18] sm:$0xf] %vm607_vm0, %v454_v17  ;;  %v459_v19 = vmul.f32 %v454_v17, %v351_v16 }
  0x6f   :  { %v460_v3 = vmul.f32 2.0, %v459_v19  ;;  %v462_v5 = vmul.f32 2.0, %v461_v18 }
  0x71   :  { %465 = vst.msk [vmem:[#allocation5 + $0x1c] sm:$0xf] %vm607_vm0, %v460_v3  ;;  %v463_v6 = vsub.f32 1.0, %v462_v5 }
  0x73   :  { %467 = vst.msk [vmem:[#allocation5 + $0x20] sm:$0xf] %vm607_vm0, %v463_v6 }
  0x74   :  { %560 = shalt.err (!%p557_p12)
}
  0x75   :  { %s561_s22 = scalar_lea.hbm %s712_s1, 576 }
  0x76   :  { %p562_p13 = scmp.ne.s32.totalorder %s712_s1, %s561_s22  ;;  %p565_p0 = scmp.lt.u32.totalorder %s561_s22, %s712_s1 }
  0x78   :  { %p567_p1 = pnand %p565_p0, %p562_p13 }
  0x7a   :  { %570 = shalt.err (!%p567_p1)
}
  0x7b   :  { %s583_s27 = smov 64   ;;  %s584_s28 = smov 4  }
  0x7c   :  { %479 = dma.vmem_to_hbm [thread:$0]  %s474_s18, 576, %s712_s1, [#allocation4], %s583_s27, %s583_s27, %s584_s28  }
  0x7d   :  { %573 = dma.done.wait [#allocation4], 576  }
  0x7e   :  { %574 = vsyncadd [#allocation4], 4294966720 }
  0x7f   :  { %483 = vsyncpa [#allocation3], 1 }
  0x80   :  { %484 = vsyncpa [#allocation4], 1 }

</bundles_post_ra>
